<compile_context>
chip_gen: v7x
topology: tpu7x:2x2x1
jax: 0.10.0
libtpu: 0.0.40
codegen_flags: <defaults>
</compile_context>

<pallas_src>
import functools

import jax
import jax.numpy as jnp
from jax.experimental import pallas as pl
from jax.experimental.pallas import tpu as pltpu

_COS_EPS = 1e-6
# Per-step VMEM working-set budget used to size the batch tile.  Conservative enough for
# the 16 MiB (v5e) / 32 MiB (v6e, v7x) scoped defaults with double-buffered inputs.
_VMEM_TILE_BUDGET = 12 * 1024 * 1024


def _contrastive_loss_kernel(a_ref, p_ref, n_ref, o_ref, acc_ref, *, batch):
    """a_ref: (TB, D) anchors; p_ref: (TB, D) last positive; n_ref: (TB, N, D) negatives;
    o_ref: (1, 1) scalar loss; acc_ref: (1, 1) f32 running CE sum (persists across grid)."""
    i = pl.program_id(0)
    tb = a_ref.shape[0]

    @pl.when(i == 0)
    def _init():
        acc_ref[...] = jnp.zeros_like(acc_ref)

    a = a_ref[...].astype(jnp.float32)            # (TB, D)
    p = p_ref[...].astype(jnp.float32)            # (TB, D)
    n = n_ref[...].astype(jnp.float32)            # (TB, N, D)

    # squared norms (feature axis = lane axis)
    a_sq = jnp.sum(a * a, axis=-1, keepdims=True)          # (TB, 1)
    p_sq = jnp.sum(p * p, axis=-1, keepdims=True)          # (TB, 1)
    n_sq = jnp.sum(n * n, axis=-1)                          # (TB, N)

    # dot products: fused multiply-reduce, no (TB, N, D) f32 broadcast temporary
    dots_pos = jnp.sum(a * p, axis=-1, keepdims=True)       # (TB, 1)
    dots_neg = jnp.einsum(
        'bqd,bkd->bqk', a[:, None, :], n,
        preferred_element_type=jnp.float32)[:, 0, :]         # (TB, N)

    # cosine similarity: dot / max(||a||*||s||, eps)  ==  dot * rsqrt(max(a2*s2, eps^2))
    eps_sq = _COS_EPS * _COS_EPS
    sim_pos = dots_pos * jax.lax.rsqrt(jnp.maximum(a_sq * p_sq, eps_sq))   # (TB, 1)
    sim_neg = dots_neg * jax.lax.rsqrt(jnp.maximum(a_sq * n_sq, eps_sq))   # (TB, N)

    # cross entropy with target class 0 over logits [sim_pos | sim_neg]
    m = jnp.maximum(sim_pos, jnp.max(sim_neg, axis=-1, keepdims=True))     # (TB, 1)
    denom = jnp.exp(sim_pos - m) + jnp.sum(jnp.exp(sim_neg - m), axis=-1, keepdims=True)
    ce = m + jnp.log(denom) - sim_pos                                      # (TB, 1)

    # mask rows of a padded final batch tile
    row = i * tb + jax.lax.broadcasted_iota(jnp.int32, (tb, 1), 0)
    ce = jnp.where(row < batch, ce, 0.0)

    acc_ref[...] += jnp.sum(ce, axis=0, keepdims=True)                     # (1, 1)

    @pl.when(i == pl.num_programs(0) - 1)
    def _finalize():
        o_ref[...] = acc_ref[...] * (1.0 / batch)


def _pick_batch_tile(batch, num_neg, dim, itemsize):
    """Largest batch tile whose double-buffered inputs + f32 working copies fit the budget."""
    row_bytes = (num_neg + 2) * dim * (2 * itemsize + 4)
    tb = max(1, _VMEM_TILE_BUDGET // max(row_bytes, 1))
    tb = min(tb, batch)
    if tb < batch:
        # second-to-last dim of the 2-D anchor/positive block must be a multiple of 8
        # unless it spans the whole batch
        tb = max(8, (tb // 8) * 8)
        tb = min(tb, batch)
    return int(tb)


def _pallas_contrastive_loss(anchor_2d, pos_2d, negatives):
    """anchor_2d, pos_2d: (B, D); negatives: (B, N, D) -> scalar f32 loss."""
    batch, dim = anchor_2d.shape
    num_neg = negatives.shape[1]
    itemsize = jnp.dtype(negatives.dtype).itemsize
    tb = _pick_batch_tile(batch, num_neg, dim, itemsize)
    grid = pl.cdiv(batch, tb)

    # NOTE: for peak lane/DMA efficiency real workloads should use D % 128 == 0 (the
    # feature axis sits on the 128-wide lane dimension); smaller D still runs correctly,
    # just with masked lanes.
    kernel = functools.partial(_contrastive_loss_kernel, batch=batch)
    out = pl.pallas_call(
        kernel,
        out_shape=jax.ShapeDtypeStruct((1, 1), jnp.float32),
        grid_spec=pltpu.PrefetchScalarGridSpec(
            num_scalar_prefetch=0,
            grid=(grid,),
            in_specs=[
                pl.BlockSpec((tb, dim), lambda i: (i, 0)),
                pl.BlockSpec((tb, dim), lambda i: (i, 0)),
                pl.BlockSpec((tb, num_neg, dim), lambda i: (i, 0, 0)),
            ],
            out_specs=pl.BlockSpec((1, 1), lambda i: (0, 0)),
            scratch_shapes=[pltpu.VMEM((1, 1), jnp.float32)],
        ),
        compiler_params=pltpu.CompilerParams(
            dimension_semantics=("arbitrary",),
            vmem_limit_bytes=32 * 1024 * 1024,
        ),
    )(anchor_2d, pos_2d, negatives)
    return out[0, 0]


class ContrastiveLoss:
    """JAX/Pallas port of models.GeneralModels.ContrastiveLoss (forward only)."""

    def __init__(self, args):
        self.embedding_dim = args['audio_model']['embedding_dim']  # unused in forward (as in reference)
        self.margin = args['margin']                               # unused in forward (as in reference)

    def forward(self, anchor, positives, negatives):
        # anchor: (B, 1, D), positives: (B, P, D), negatives: (B, N, D)
        # The reference overwrites `loss` on every loop iteration; only p = P-1 survives,
        # so only the last positive row is sent to the kernel (no DMA of unused positives,
        # no HBM concat).
        p_last = positives.shape[1] - 1
        return _pallas_contrastive_loss(
            anchor[:, 0, :], positives[:, p_last, :], negatives)

    def encode(self, anchor, positives, negatives):
        # TODO(synk): encode() returns the raw similarity matrix; not the forward hot path,
        # so it is implemented in plain JAX glue here.
        samples = jnp.concatenate([positives, negatives], axis=1)
        a = anchor[:, 0:1, :].astype(jnp.float32)
        s = samples.astype(jnp.float32)
        dots = jnp.sum(a * s, axis=-1)
        sim = dots / jnp.maximum(
            jnp.linalg.norm(a, axis=-1) * jnp.linalg.norm(s, axis=-1), _COS_EPS)
        labels = jnp.zeros((sim.shape[0],), dtype=jnp.int32)
        return sim, labels


def _reference_loss(anchor, positives, negatives):
    """Pure-JAX reference mirroring the PyTorch forward, for validation."""
    num_pos = positives.shape[1]
    loss = None
    for p in range(num_pos):
        samples = jnp.concatenate([positives[:, p:p + 1, :], negatives], axis=1)
        a = anchor[:, 0:1, :].astype(jnp.float32)
        s = samples.astype(jnp.float32)
        dots = jnp.sum(a * s, axis=-1)
        sim = dots / jnp.maximum(
            jnp.linalg.norm(a, axis=-1) * jnp.linalg.norm(s, axis=-1), _COS_EPS)
        lse = jax.scipy.special.logsumexp(sim, axis=-1)
        loss = jnp.mean(lse - sim[:, 0])
    return loss


if __name__ == "__main__":
    B, P, N, D = 2, 3, 4, 32
    args = {'audio_model': {'embedding_dim': D}, 'margin': 1.0}

    key = jax.random.PRNGKey(0)
    k1, k2, k3 = jax.random.split(key, 3)
    anchor = jax.random.normal(k1, (B, 1, D), dtype=jnp.float32)
    positives = jax.random.normal(k2, (B, P, D), dtype=jnp.float32)
    negatives = jax.random.normal(k3, (B, N, D), dtype=jnp.float32)

    model = ContrastiveLoss(args)
    loss = model.forward(anchor, positives, negatives)
    loss = jax.block_until_ready(loss)

    ref = _reference_loss(anchor, positives, negatives)
    assert jnp.allclose(loss, ref, rtol=1e-4, atol=1e-5), (loss, ref)

    print("KERNEL_OK")
</pallas_src>

<mosaic_0001>
module attributes {stable_mosaic.version = 11 : i64} {
  func.func @_contrastive_loss_kernel(%arg0: i32, %arg1: memref<2x32xf32, #tpu.memory_space<vmem>>, %arg2: memref<2x32xf32, #tpu.memory_space<vmem>>, %arg3: memref<2x4x32xf32, #tpu.memory_space<vmem>>, %arg4: memref<1x1xf32, #tpu.memory_space<vmem>>, %arg5: memref<1x1xf32, #tpu.memory_space<vmem>>) attributes {dimension_semantics = [#tpu.dimension_semantics<arbitrary>], iteration_bounds = array<i64: 1>, scalar_prefetch = 0 : i64, scratch_operands = 1 : i64, tpu.core_type = #tpu.core_type<tc>, window_params = [{transform_indices = @transform_0, window_bounds = array<i64: 2, 32>}, {transform_indices = @transform_1, window_bounds = array<i64: 2, 32>}, {transform_indices = @transform_2, window_bounds = array<i64: 2, 4, 32>}, {pipeline_mode = #tpu.pipeline_mode<synchronous>, transform_indices = @transform_3, window_bounds = array<i64: 1, 1>}]} {
    %c0_i32 = arith.constant 0 : i32
    %0 = arith.cmpi eq, %arg0, %c0_i32 : i32
    %1 = arith.extui %0 : i1 to i32
    %c0_i32_0 = arith.constant 0 : i32
    %2 = arith.cmpi ne, %1, %c0_i32_0 : i32
    scf.if %2 {
      %cst_24 = arith.constant 0.000000e+00 : f32
      %61 = vector.broadcast %cst_24 : f32 to vector<1x1xf32>
      %c0_25 = arith.constant 0 : index
      %c0_26 = arith.constant 0 : index
      %62 = vector.load %arg5[%c0_25, %c0_26] : memref<1x1xf32, #tpu.memory_space<vmem>>, vector<1x1xf32>
      tpu.vector_store %arg5[%c0_25, %c0_26], %61 {strides = array<i32>} : memref<1x1xf32, #tpu.memory_space<vmem>>, vector<1x1xf32>,
    } else {
    }
    %c0 = arith.constant 0 : index
    %c0_1 = arith.constant 0 : index
    %3 = vector.load %arg1[%c0, %c0_1] : memref<2x32xf32, #tpu.memory_space<vmem>>, vector<2x32xf32>
    %c0_2 = arith.constant 0 : index
    %c0_3 = arith.constant 0 : index
    %4 = vector.load %arg2[%c0_2, %c0_3] : memref<2x32xf32, #tpu.memory_space<vmem>>, vector<2x32xf32>
    %c0_4 = arith.constant 0 : index
    %c0_5 = arith.constant 0 : index
    %c0_6 = arith.constant 0 : index
    %5 = vector.load %arg3[%c0_4, %c0_5, %c0_6] : memref<2x4x32xf32, #tpu.memory_space<vmem>>, vector<2x4x32xf32>
    %6 = arith.mulf %3, %3 : vector<2x32xf32>
    %cst = arith.constant dense<0.000000e+00> : vector<2xf32>
    %7 = vector.multi_reduction <add>, %6, %cst [1] : vector<2x32xf32> to vector<2xf32>
    %8 = vector.shape_cast %7 : vector<2xf32> to vector<2x1xf32>
    %9 = arith.mulf %4, %4 : vector<2x32xf32>
    %cst_7 = arith.constant dense<0.000000e+00> : vector<2xf32>
    %10 = vector.multi_reduction <add>, %9, %cst_7 [1] : vector<2x32xf32> to vector<2xf32>
    %11 = vector.shape_cast %10 : vector<2xf32> to vector<2x1xf32>
    %12 = arith.mulf %5, %5 : vector<2x4x32xf32>
    %cst_8 = arith.constant dense<0.000000e+00> : vector<2x4xf32>
    %13 = vector.multi_reduction <add>, %12, %cst_8 [2] : vector<2x4x32xf32> to vector<2x4xf32>
    %14 = arith.mulf %3, %4 : vector<2x32xf32>
    %cst_9 = arith.constant dense<0.000000e+00> : vector<2xf32>
    %15 = vector.multi_reduction <add>, %14, %cst_9 [1] : vector<2x32xf32> to vector<2xf32>
    %16 = vector.shape_cast %15 : vector<2xf32> to vector<2x1xf32>
    %17 = vector.shape_cast %3 : vector<2x32xf32> to vector<2x1x32xf32>
    "tpu.trace_start"() <{level = 10 : i32, message = "bqd,bkd->bqk"}> : () -> ()
    %cst_10 = arith.constant dense<0.000000e+00> : vector<2x1x4xf32>
    %18 = tpu.matmul %17, %5, %cst_10 {dimension_numbers = #tpu.dot_dimension_numbers<[2], [2], [1], [1], [0, 0, 0, 1, 1, 1], [0], [0]>} : vector<2x1x32xf32>, vector<2x4x32xf32>, vector<2x1x4xf32> -> vector<2x1x4xf32>
    "tpu.trace_stop"() : () -> ()
    %19 = vector.shape_cast %18 : vector<2x1x4xf32> to vector<2x4xf32>
    %20 = arith.mulf %8, %11 : vector<2x1xf32>
    %cst_11 = arith.constant 9.99999996E-13 : f32
    %21 = vector.broadcast %cst_11 : f32 to vector<2x1xf32>
    %22 = arith.maximumf %20, %21 : vector<2x1xf32>
    %23 = math.rsqrt %22 : vector<2x1xf32>
    %24 = arith.mulf %16, %23 : vector<2x1xf32>
    %25 = vector.broadcast %8 : vector<2x1xf32> to vector<2x4xf32>
    %26 = arith.mulf %25, %13 : vector<2x4xf32>
    %cst_12 = arith.constant 9.99999996E-13 : f32
    %27 = vector.broadcast %cst_12 : f32 to vector<2x4xf32>
    %28 = arith.maximumf %26, %27 : vector<2x4xf32>
    %29 = math.rsqrt %28 : vector<2x4xf32>
    %30 = arith.mulf %19, %29 : vector<2x4xf32>
    %cst_13 = arith.constant dense<0xFF800000> : vector<2xf32>
    %31 = vector.multi_reduction <maximumf>, %30, %cst_13 [1] : vector<2x4xf32> to vector<2xf32>
    %32 = vector.shape_cast %31 : vector<2xf32> to vector<2x1xf32>
    %33 = arith.maximumf %24, %32 : vector<2x1xf32>
    %34 = arith.subf %24, %33 : vector<2x1xf32>
    %35 = math.exp %34 : vector<2x1xf32>
    %36 = vector.broadcast %33 : vector<2x1xf32> to vector<2x4xf32>
    %37 = arith.subf %30, %36 : vector<2x4xf32>
    %38 = math.exp %37 : vector<2x4xf32>
    %cst_14 = arith.constant dense<0.000000e+00> : vector<2xf32>
    %39 = vector.multi_reduction <add>, %38, %cst_14 [1] : vector<2x4xf32> to vector<2xf32>
    %40 = vector.shape_cast %39 : vector<2xf32> to vector<2x1xf32>
    %41 = arith.addf %35, %40 : vector<2x1xf32>
    %42 = math.log %41 : vector<2x1xf32>
    %43 = arith.addf %33, %42 : vector<2x1xf32>
    %44 = arith.subf %43, %24 : vector<2x1xf32>
    %c2_i32 = arith.constant 2 : i32
    %45 = arith.muli %arg0, %c2_i32 : i32
    %46 = tpu.iota {dimensions = array<i32: 0>} : vector<2x1xi32>
    %47 = vector.broadcast %45 : i32 to vector<2x1xi32>
    %48 = arith.addi %47, %46 : vector<2x1xi32>
    %c2_i32_15 = arith.constant 2 : i32
    %49 = vector.broadcast %c2_i32_15 : i32 to vector<2x1xi32>
    %50 = arith.cmpi slt, %48, %49 : vector<2x1xi32>
    %cst_16 = arith.constant 0.000000e+00 : f32
    %51 = vector.broadcast %cst_16 : f32 to vector<2x1xf32>
    %52 = arith.select %50, %44, %51 : vector<2x1xi1>, vector<2x1xf32>
    %c0_17 = arith.constant 0 : index
    %c0_18 = arith.constant 0 : index
    %53 = vector.load %arg5[%c0_17, %c0_18] : memref<1x1xf32, #tpu.memory_space<vmem>>, vector<1x1xf32>
    %cst_19 = arith.constant dense<0.000000e+00> : vector<1xf32>
    %54 = vector.multi_reduction <add>, %52, %cst_19 [0] : vector<2x1xf32> to vector<1xf32>
    %55 = vector.shape_cast %54 : vector<1xf32> to vector<1x1xf32>
    %56 = arith.addf %53, %55 : vector<1x1xf32>
    %c0_20 = arith.constant 0 : index
    %c0_21 = arith.constant 0 : index
    %57 = vector.load %arg5[%c0_20, %c0_21] : memref<1x1xf32, #tpu.memory_space<vmem>>, vector<1x1xf32>
    tpu.vector_store %arg5[%c0_20, %c0_21], %56 {strides = array<i32>} : memref<1x1xf32, #tpu.memory_space<vmem>>, vector<1x1xf32>,
    %c0_i32_22 = arith.constant 0 : i32
    %58 = arith.cmpi eq, %arg0, %c0_i32_22 : i32
    %59 = arith.extui %58 : i1 to i32
    %c0_i32_23 = arith.constant 0 : i32
    %60 = arith.cmpi ne, %59, %c0_i32_23 : i32
    scf.if %60 {
      %c0_24 = arith.constant 0 : index
      %c0_25 = arith.constant 0 : index
      %61 = vector.load %arg5[%c0_24, %c0_25] : memref<1x1xf32, #tpu.memory_space<vmem>>, vector<1x1xf32>
      %cst_26 = arith.constant 5.000000e-01 : f32
      %62 = vector.broadcast %cst_26 : f32 to vector<1x1xf32>
      %63 = arith.mulf %61, %62 : vector<1x1xf32>
      %c0_27 = arith.constant 0 : index
      %c0_28 = arith.constant 0 : index
      %64 = vector.load %arg4[%c0_27, %c0_28] : memref<1x1xf32, #tpu.memory_space<vmem>>, vector<1x1xf32>
      tpu.vector_store %arg4[%c0_27, %c0_28], %63 {strides = array<i32>} : memref<1x1xf32, #tpu.memory_space<vmem>>, vector<1x1xf32>,
    } else {
    }
    return
  }
  func.func @transform_0(%arg0: i32) -> (i32, i32) {
    %c0_i32 = arith.constant 0 : i32
    %c0_i32_0 = arith.constant 0 : i32
    return %arg0, %c0_i32 : i32, i32
  }
  func.func @transform_1(%arg0: i32) -> (i32, i32) {
    %c0_i32 = arith.constant 0 : i32
    %c0_i32_0 = arith.constant 0 : i32
    return %arg0, %c0_i32 : i32, i32
  }
  func.func @transform_2(%arg0: i32) -> (i32, i32, i32) {
    %c0_i32 = arith.constant 0 : i32
    %c0_i32_0 = arith.constant 0 : i32
    %c0_i32_1 = arith.constant 0 : i32
    return %arg0, %c0_i32, %c0_i32_0 : i32, i32, i32
  }
  func.func @transform_3(%arg0: i32) -> (i32, i32) {
    %c0_i32 = arith.constant 0 : i32
    %c0_i32_0 = arith.constant 0 : i32
    %c0_i32_1 = arith.constant 0 : i32
    return %c0_i32, %c0_i32_0 : i32, i32
  }
}

</mosaic_0001>

<bundles_post_ra>
// kernel: tpu_custom_call.1
= control target key start
LH: loop header
LB: loop body
LE: loop exit
PB: predicated region body
PF: predicated region fallthrough
CT: control target
= control target key end

     0   :  { %8 = vsyncpa [#allocation4], 0  ;;  %s563_s0 = inlined_call_operand.hbm [shape: f32[2,32], index: 0, kind: input, shape index: {}]   ;;  %s564_s1 = inlined_call_operand.vmem [shape: f32[2,32], index: 1, kind: input, shape index: {}]   ;;  %s565_s2 = inlined_call_operand.hbm [shape: f32[2,4,32], index: 2, kind: input, shape index: {}]   ;;  %s566_s3 = inlined_call_operand.hbm [shape: f32[1,1], index: 3, kind: output, shape index: {}]  }
   0x1   :  { %9 = vsyncpa [#allocation7], 0 }
   0x2   :  { %10 = vsyncpa [#allocation5], 0  ;;  %s462_s12 = smov [#allocation3]   ;;  %s463_s14 = smov [#allocation6]  }
   0x3   :  { %s17_s13 = sshll.u32 %s462_s12, 4  ;;  %s28_s15 = sshll.u32 %s463_s14, 4  ;;  %s18_s13 = int_to_ptr.vmem [resolvable:$true] %s17_s13  ;;  %s490_s15 = int_to_ptr.vmem [resolvable:$true] %s28_s15 }
   0x4   :  { %s390_s18 = scalar_lea.hbm %s563_s0, 32 }
   0x5   :  { %p391_p0 = scmp.ne.s32.totalorder %s563_s0, %s390_s18  ;;  %p394_p1 = scmp.lt.u32.totalorder %s390_s18, %s563_s0 }
   0x7   :  { %p396_p2 = pnand %p394_p1, %p391_p0 }
   0x9   :  { %399 = shalt.err (!%p396_p2)
}
   0xa   :  { %s400_s23 = scalar_lea.vmem %s18_s13, 32  ;;  %p405_p4 = scmp.lt.s32.totalorder %s18_s13, %s18_s13 }
   0xb   :  { %p401_p3 = scmp.ne.s32.totalorder %s18_s13, %s400_s23  ;;  %p406_p5 = scmp.lt.s32.totalorder %s400_s23, %s400_s23 }
   0xd   :  { %p407_p6 = por %p406_p5, %p405_p4 }
   0xf   :  { %p408_p7 = pnand %p407_p6, %p401_p3 }
  0x11   :  { %411 = shalt.err (!%p408_p7)
}
  0x12   :  { %20 = dma.hbm_to_vmem [thread:$0]  %s563_s0, 32, %s18_s13, [#allocation4]  }
  0x13   :  { %s412_s28 = scalar_lea.hbm %s565_s2, 128 }
  0x14   :  { %p413_p8 = scmp.ne.s32.totalorder %s565_s2, %s412_s28  ;;  %p416_p9 = scmp.lt.u32.totalorder %s412_s28, %s565_s2 }
  0x16   :  { %p418_p10 = pnand %p416_p9, %p413_p8 }
  0x18   :  { %421 = shalt.err (!%p418_p10)
}
  0x19   :  { %s422_s6 = scalar_lea.vmem %s490_s15, 128  ;;  %p427_p12 = scmp.lt.s32.totalorder %s490_s15, %s490_s15 }
  0x1a   :  { %p423_p11 = scmp.ne.s32.totalorder %s490_s15, %s422_s6  ;;  %p428_p13 = scmp.lt.s32.totalorder %s422_s6, %s422_s6 }
  0x1c   :  { %p429_p0 = por %p428_p13, %p427_p12 }
  0x1e   :  { %p430_p1 = pnand %p429_p0, %p423_p11 }
  0x20   :  { %433 = shalt.err (!%p430_p1)
}
  0x21   :  { %s464_s0 = smov 64   ;;  %s465_s7 = smov 4  }
  0x22   :  { %34 = dma.hbm_to_vmem [thread:$0]  %s565_s2, 128, %s490_s15, [#allocation7], %s464_s0, %s464_s0, %s465_s7  }
  0x23   :  { %456 = dma.done.wait [#allocation4], 32  }
  0x24   :  { %457 = vsyncadd [#allocation4], 4294967264 }
  0x25   :  { %458 = dma.done.wait [#allocation7], 128  }
  0x26   :  { %459 = vsyncadd [#allocation7], 4294967168  ;;  %v77_v0 = vlaneseq  ;;  %v466_v1 = vmov 0.0   ;;  %vm467_vm0 = vmmov 0   ;;  %v468_v2 = vmov 1966171168  }
  0x27   :  { %360 = vmatprep.subr.mxu0 %v466_v1  ;;  %365 = vmatprep.subr.mxu1 %v466_v1  ;;  %v75_v3 = vunpack.c.l.s4 %v468_v2  ;;  %vm96_vm1 = vcmask 261120   ;;  %vm62_vm2 = vcmask 257024   ;;  %v49_v7 = vld [vmem:[#allocation6] sm:$0xf]  ;;  %v50_v8 = vld [vmem:[#allocation6 + $0x4] sm:$0xf] }
  0x28   :  { %362 = vmatprep.mubr.msk.f32.mxu0 %vm467_vm0, %v466_v1  ;;  %v524_v4 = vshrl.u32 %v77_v0, 7  ;;  %367 = vmatprep.mubr.msk.f32.mxu1 %vm467_vm0, %v466_v1  ;;  %v47_v9 = vld [vmem:[#allocation3] sm:$0x3]  ;;  %v60_v11 = vmul.f32 %v49_v7, %v49_v7  ;;  %v61_v12 = vmul.f32 %v50_v8, %v50_v8  ;;  %vm52_vm3 = vcmask 254976  }
  0x29   :  { %v76_v5 = vunpack.c.0.s8 %v75_v3  ;;  %361 = vmatpush3.xpose.msk.msra.mxu0 %vm96_vm1, %v49_v7  ;;  %366 = vmatpush3.xpose.msk.msra.mxu1 %vm96_vm1, %v50_v8  ;;  %v48_v13 = vld [vmem:[%s564_s1] sm:$0x3]  ;;  %v51_v14 = vmul.f32 %v47_v9, %v47_v9  ;;  %v254_v26 = vand.u32 127, %v77_v0  ;;  %vm263_vm4 = vcmask 1041409   ;;  %s469_s1 = smov [#allocation8]  }
  0x2a   :  { %v56_v15 = vmul.f32 %v48_v13, %v48_v13  ;;  %v63_v18 = vsel %vm62_vm2, %v60_v11, 0.0  ;;  %v66_v21 = vsel %vm62_vm2, %v61_v12, 0.0  ;;  %v69_v22 = vmul.f32 %v48_v13, %v47_v9  ;;  %s342_s11 = sshll.u32 %s469_s1, 4  ;;  %s343_s11 = int_to_ptr.vmem [resolvable:$true] %s342_s11 }
  0x2b   :  { %v79_v6 = vsub.s32 %v76_v5, %v524_v4  ;;  %64 = vadd.xlane.f32.xlu0 %v63_v18  ;;  %v53_v19 = vsel %vm52_vm3, %v51_v14, 0.0  ;;  %v257_v27 = vsub.s32 %v254_v26, %v524_v4  ;;  %vm280_vm5 = vcmask 25600   ;;  %s434_s12 = scalar_lea.vmem %s343_s11, 16  ;;  %s438_s13 = scalar_lea.vmem %s343_s11, 32 }
  0x2c   :  { %54 = vadd.xlane.f32.xlu1 %v53_v19  ;;  %v57_v23 = vsel %vm52_vm3, %v56_v15, 0.0  ;;  %v70_v24 = vsel %vm52_vm3, %v69_v22, 0.0  ;;  %vm45_vm6 = vcmask 0   ;;  %vm316_vm7 = vcmp.lt.s32.totalorder %v524_v4, 2  ;;  %p435_p2 = scmp.ne.s32.totalorder %s343_s11, %s434_s12  ;;  %p439_p3 = scmp.lt.s32.totalorder %s343_s11, %s343_s11 }
  0x2d   :  { %v80_v10 = vrot.slane %v47_v9, %v79_v6  ;;  %46 = vst.msk [vmem:[#allocation2] sm:$0x1] %vm45_vm6, %v466_v1  ;;  %vm319_vm8 = vcmask 1041408   ;;  %p440_p4 = scmp.lt.s32.totalorder %s438_s13, %s434_s12 }
  0x2f   :  { %v88_v16 = vrot.slane %v80_v10, %v79_v6  ;;  %v81_v17 = vcombine.high %v80_v10, %v80_v10  ;;  %67 = vadd.xlane.f32.xlu0 %v66_v21  ;;  %p441_p5 = por %p440_p4, %p439_p3 }
  0x30   :  { %58 = vadd.xlane.f32.xlu1 %v57_v23 }
  0x31   :  { %363 = vmatmul.mubr.msk.f32.vlgmr.msra.gmra.mrb[0].mxu0 %vm96_vm1, %v88_v16  ;;  %v95_v20 = vrot.slane %v81_v17, %v79_v6  ;;  %p442_p6 = pnand %p441_p5, %p435_p2 }
  0x33   :  { %368 = vmatmul.mubr.msk.f32.vlgmr.msra.gmra.mrb[0].mxu1 %vm96_vm1, %v95_v20  ;;  %71 = vadd.xlane.f32.xlu0 %v70_v24 }
  0x34   :  { %v318_v17 = vld [vmem:[#allocation2] sm:$0x1] }
  0xb8   :  { %v65_v25 = vpop.xlane.xlu0 %64 }
  0xb9   :  { %v258_v29 = vrot.slane %v65_v25, %v257_v27  ;;  %v55_v32 = vpop.xlane.xlu1 %54 }
  0xbc   :  { %v68_v28 = vpop.xlane.xlu0 %67 }
  0xbd   :  { %v262_v30 = vrot.slane %v68_v28, %v257_v27  ;;  %v59_v46 = vpop.xlane.xlu1 %58 }
  0xbe   :  { %v247_v47 = vmul.f32 %v59_v46, %v55_v32 }
  0xbf   :  { %v264_v31 = vsel %vm263_vm4, %v262_v30, %v258_v29 }
  0xc0   :  { %v266_v33 = vmul.f32 %v264_v31, %v55_v32  ;;  %v248_v48 = vmax.f32 %v247_v47, 1e-12  ;;  %v72_v50 = vpop.xlane.xlu0 %71 }
  0xc2   :  { %v267_v34 = vmax.f32 %v266_v33, 1e-12 }
  0xc4   :  { %378 = vrsqrt.f32 %v267_v34 }
  0xc5   :  { %380 = vrsqrt.f32 %v248_v48 }
  0xce   :  { %v379_v35 = vpop.eup %378 }
  0xcf   :  { %v270_v38 = vrot.slane %v379_v35, 1  ;;  %v381_v49 = vpop.eup %380 }
  0xd0   :  { %v250_v51 = vmul.f32 %v381_v49, %v72_v50 }
 0x104   :  { %v168_v36 = vpop.f32.mrb[0].mxu0 }
 0x105   :  { %v273_v37 = vmul.f32 %v379_v35, %v168_v36  ;;  %v364_v39 = vpop.f32.mrb[1].mxu0 }
 0x106   :  { %v243_v40 = vpop.f32.mrb[0].mxu1 }
 0x107   :  { %v274_v41 = vmul.f32 %v270_v38, %v243_v40  ;;  %v369_v42 = vpop.f32.mrb[1].mxu1 }
 0x109   :  { %v277_v43 = vrot.slane %v274_v41, 7 }
 0x10b   :  { %v278_v44 = vsel %vm263_vm4, %v277_v43, %v273_v37 }
 0x10c   :  { %v281_v45 = vsel %vm280_vm5, %v278_v44, -inf }
 0x10d   :  { %282 = vmax.xlane.f32.xlu1 %v281_v45 }
 0x19a   :  { %v283_v52 = vpop.xlane.xlu1 %282 }
 0x19b   :  { %v284_v53 = vmax.f32 %v250_v51, %v283_v52 }
 0x19d   :  { %v289_v54 = vrot.slane %v284_v53, 1  ;;  %v292_v55 = vsub.f32 %v273_v37, %v284_v53  ;;  %v285_v0 = vsub.f32 %v250_v51, %v284_v53 }
 0x19f   :  { %v293_v56 = vsub.f32 %v274_v41, %v289_v54  ;;  %v294_v57 = vmul.f32 1.442695, %v292_v55  ;;  %v286_v2 = vmul.f32 1.442695, %v285_v0 }
 0x1a1   :  { %v296_v58 = vmul.f32 1.442695, %v293_v56 }
 0x1a3   :  { %382 = vpow2.f32 %v296_v58 }
 0x1a4   :  { %384 = vpow2.f32 %v294_v57 }
 0x1a5   :  { %386 = vpow2.f32 %v286_v2 }
 0x1ad   :  { %v383_v59 = vpop.eup %382 }
 0x1ae   :  { %v300_v60 = vrot.slane %v383_v59, 7  ;;  %v385_v61 = vpop.eup %384 }
 0x1af   :  { %v387_v3 = vpop.eup %386 }
 0x1b0   :  { %v301_v62 = vsel %vm263_vm4, %v300_v60, %v385_v61 }
 0x1b1   :  { %v303_v63 = vsel %vm280_vm5, %v301_v62, 0.0 }
 0x1b2   :  { %304 = vadd.xlane.f32.xlu0 %v303_v63 }
 0x23f   :  { %v305_v5 = vpop.xlane.xlu0 %304 }
 0x240   :  { %v306_v6 = vadd.f32 %v387_v3, %v305_v5 }
 0x242   :  { %388 = vlog2.f32 %v306_v6 }
 0x24c   :  { %v389_v7 = vpop.eup %388 }
 0x24d   :  { %v308_v8 = vmul.f32 0.6931472, %v389_v7 }
 0x24f   :  { %v309_v9 = vadd.f32 %v308_v8, %v284_v53 }
 0x251   :  { %v310_v10 = vsub.f32 %v309_v9, %v250_v51 }
 0x253   :  { %v317_v11 = vsel %vm316_vm7, %v310_v10, 0.0 }
 0x254   :  { %v320_v12 = vsel %vm319_vm8, %v317_v11, 0.0 }
 0x255   :  { %v321_v13 = vrot.slane %v320_v12, 4 }
 0x257   :  { %v322_v14 = vadd.f32 %v321_v13, %v320_v12 }
 0x259   :  { %v323_v15 = vrot.slane %v322_v14, 2 }
 0x25b   :  { %v324_v1 = vadd.f32 %v323_v15, %v322_v14 }
 0x25d   :  { %v325_v16 = vrot.slane %v324_v1, 1 }
 0x25f   :  { %v326_v18 = vadd.f32 %v325_v16, %v324_v1 }
 0x261   :  { %v327_v19 = vadd.f32 %v326_v18, %v318_v17 }
 0x263   :  { %329 = vst.msk [vmem:[#allocation2] sm:$0x1] %vm45_vm6, %v327_v19 }
 0x26a   :  { %v333_v20 = vld [vmem:[#allocation2] sm:$0x1] }
 0x26b   :  { %v334_v21 = vmul.f32 0.5, %v333_v20 }
 0x26d   :  { %335 = vst.msk [vmem:[#allocation8] sm:$0x1] %vm45_vm6, %v334_v21 }
 0x26e   :  { %445 = shalt.err (!%p442_p6)
}
 0x26f   :  { %s446_s16 = scalar_lea.hbm %s566_s3, 16 }
 0x270   :  { %p447_p7 = scmp.ne.s32.totalorder %s566_s3, %s446_s16  ;;  %p450_p8 = scmp.lt.u32.totalorder %s446_s16, %s566_s3 }
 0x272   :  { %p452_p9 = pnand %p450_p8, %p447_p7 }
 0x274   :  { %455 = shalt.err (!%p452_p9)
}
 0x275   :  { %345 = dma.vmem_to_hbm [thread:$0]  %s343_s11, 16, %s566_s3, [#allocation5]  }
 0x276   :  { %460 = dma.done.wait [#allocation5], 16  }
 0x277   :  { %461 = vsyncadd [#allocation5], 4294967280 }
 0x278   :  { %349 = vsyncpa [#allocation4], 1 }
 0x279   :  { %350 = vsyncpa [#allocation7], 1 }
 0x27a   :  { %351 = vsyncpa [#allocation5], 1 }

</bundles_post_ra>
